<compile_context>
chip_gen: v7x
topology: tpu7x:2x2x1
jax: 0.10.0
libtpu: 0.0.40
codegen_flags: <defaults>
</compile_context>

<pallas_src>
import math
from functools import partial

import jax
import jax.numpy as jnp
from jax.experimental import pallas as pl
from jax.experimental.pallas import tpu as pltpu


# ----------------------------------------------------------------------------------
# Small helpers
# ----------------------------------------------------------------------------------
def _round_up(x, m):
    return ((x + m - 1) // m) * m


def _gelu(z, approximate):
    if approximate:
        return jax.nn.gelu(z, approximate=True)  # tanh form -> EUP slot
    # Exact erf GELU: matches torch.nn.GELU() default.
    return 0.5 * z * (1.0 + jax.lax.erf(z * (1.0 / math.sqrt(2.0))))


def _spec(shape, index_map, buffers=None):
    """BlockSpec with optional explicit buffer count (falls back if unsupported)."""
    if buffers is None:
        return pl.BlockSpec(shape, index_map)
    try:
        return pl.BlockSpec(shape, index_map, pipeline_mode=pl.Buffered(buffers))
    except Exception:  # pipeline_mode / Buffered unavailable -> default double-buffering
        return pl.BlockSpec(shape, index_map)


def _vmem_budget():
    """Generation-aware scoped-VMEM budget (leaves headroom for Mosaic scratch)."""
    try:
        cap = int(pltpu.get_tpu_info().vmem_capacity_bytes)  # 64 MiB/TC v7x, 128 MiB v5e/v6e
    except Exception:
        cap = 64 << 20  # conservative fallback valid on every generation
    return max(int(0.82 * cap), 24 << 20)


def _prep2d(a, rows, cols, dtype):
    """Zero-pad to (rows, cols) and cast, skipping work when already aligned."""
    pr, pc = rows - a.shape[0], cols - a.shape[1]
    if pr or pc:
        a = jnp.pad(a, ((0, pr), (0, pc)))
    return a if a.dtype == jnp.dtype(dtype) else a.astype(dtype)


def _prep_bias(v, cols):
    pc = cols - v.shape[0]
    if pc:
        v = jnp.pad(v, (0, pc))
    return v.reshape(1, -1).astype(jnp.float32)


def _pick_tm(n, block_rows, cap_rows):
    """Row-tile size: largest multiple of 8 that fits the VMEM budget, split so there
    are >= 2 row tiles whenever N allows (both v7x TensorCores get work)."""
    n8 = _round_up(n, 8)
    cap8 = max(8, (int(cap_rows) // 8) * 8)
    tm = max(8, (min(block_rows, n8, cap8) // 8) * 8)
    if tm >= n8 and n8 >= 16:
        tm = _round_up(n8 // 2, 8)
    return tm


# ----------------------------------------------------------------------------------
# Kernels
# ----------------------------------------------------------------------------------
def _fused_kernel(x_ref, w_ref, b_ref, w1_ref, b1_ref, w2_ref, b2_ref, o_ref, *, approximate):
    """Resident-weight path: whole AdaptedLinear for one row tile."""
    # Main linear: h = x @ W + b   (f32 accumulation / f32 residual)
    h = jnp.dot(x_ref[...], w_ref[...], preferred_element_type=jnp.float32) + b_ref[...]
    # Adapter down-projection + GELU.
    z = jnp.dot(h.astype(w1_ref.dtype), w1_ref[...], preferred_element_type=jnp.float32)
    z = _gelu(z + b1_ref[...], approximate)
    # Adapter up-projection + residual around the adapter.
    up = jnp.dot(z.astype(w2_ref.dtype), w2_ref[...], preferred_element_type=jnp.float32)
    o_ref[...] = (up + b2_ref[...] + h).astype(o_ref.dtype)


def _down_kernel(x_ref, w_ref, b_ref, w1_ref, b1_ref, h_ref, a_ref, *, approximate):
    """Column-tiled path, pass 1 (grid = (row tiles, d_out tiles), d_out last/arbitrary):
    h_j = x @ W_j + b_j; a += h_j @ W1_j; GELU(a + b1) on the last d_out tile."""
    j = pl.program_id(1)
    h = jnp.dot(x_ref[...], w_ref[...], preferred_element_type=jnp.float32) + b_ref[...]
    h_ref[...] = h.astype(h_ref.dtype)

    @pl.when(j == 0)
    def _():
        a_ref[...] = jnp.zeros_like(a_ref)

    a_ref[...] += jnp.dot(h.astype(w1_ref.dtype), w1_ref[...],
                          preferred_element_type=jnp.float32)

    @pl.when(j == pl.num_programs(1) - 1)
    def _():
        a_ref[...] = _gelu(a_ref[...] + b1_ref[...], approximate)


def _up_kernel(a_ref, w2_ref, b2_ref, h_ref, o_ref):
    """Column-tiled path, pass 2: out_j = a @ W2_j + b2_j + h_j."""
    up = jnp.dot(a_ref[...].astype(w2_ref.dtype), w2_ref[...],
                 preferred_element_type=jnp.float32)
    o_ref[...] = (up + b2_ref[...] + h_ref[...]).astype(o_ref.dtype)


# ----------------------------------------------------------------------------------
# Wrapper
# ----------------------------------------------------------------------------------
def adapted_linear(x, w, b, w1, b1, w2, b2, *, block_rows=512, block_cols=None,
                   matmul_dtype=jnp.bfloat16, approximate_gelu=False,
                   force_column_tiled=False, x_buffers=None):
    """
    x:  [N, D_in]
    w:  [D_in, D_out]  (transposed torch weight)    b:  [D_out]
    w1: [D_out, D_bn]  (adapter down)               b1: [D_bn]
    w2: [D_bn, D_out]  (adapter up)                 b2: [D_out]
    Returns [N, D_out] in x.dtype.

    matmul_dtype: MXU operand dtype (default bf16; accumulation & epilogue stay f32).
    block_rows:   max row tile (actual TM derived from the per-generation VMEM budget).
    block_cols:   d_out tile for the column-tiled (large d_out) path; auto if None.
    x_buffers:    optionally deepen x-tile buffering (e.g. 3) if DMA is exposed (v5e).
    Note: weight pads/casts are skipped when already aligned; under jit they fold, and
    callers can also pre-pad/pre-cast the (static) weights once outside the call path.
    """
    n, d_in = x.shape
    d_in_w, d_out = w.shape
    d_bn = w1.shape[1]
    assert d_in_w == d_in and w1.shape[0] == d_out and w2.shape == (d_bn, d_out)
    assert b.shape == (d_out,) and b1.shape == (d_bn,) and b2.shape == (d_out,)

    mm_dtype = jnp.dtype(matmul_dtype) if matmul_dtype is not None else jnp.dtype(x.dtype)
    out_dtype = x.dtype
    mm_sz = mm_dtype.itemsize
    out_sz = jnp.dtype(out_dtype).itemsize

    # Feature dims padded to multiples of 128: lane-dense stores, full MXU tiles.
    d_in_p = _round_up(d_in, 128)
    d_out_p = _round_up(d_out, 128)
    d_bn_p = _round_up(d_bn, 128)

    budget = _vmem_budget()
    margin = 2 << 20  # Mosaic internal scratch headroom

    # ----- Resident-weight path sizing (weights single-buffered via Buffered(1)) -----
    weights_bytes = (d_in_p * d_out_p + d_out_p * d_bn_p + d_bn_p * d_out_p) * mm_sz
    bias_bytes = (2 * d_out_p + d_bn_p) * 4
    fixed_res = weights_bytes + bias_bytes + margin
    per_row_res = (2 * d_in_p * mm_sz                 # x tile, double-buffered
                   + 2 * d_out_p * out_sz             # out tile, double-buffered
                   + (2 * d_out_p + 2 * d_bn_p) * 4   # h, up, z, gelu temps (f32)
                   + (d_out_p + d_bn_p) * mm_sz)      # bf16 cast copies of h and z
    cap_rows_res = (budget - fixed_res) // per_row_res if budget > fixed_res else 0
    use_resident = (not force_column_tiled) and cap_rows_res >= 8

    if use_resident:
        tm = _pick_tm(n, block_rows, cap_rows_res)
        n_p = _round_up(n, tm)
        grid = (n_p // tm,)

        x_p = _prep2d(x, n_p, d_in_p, mm_dtype)
        w_p = _prep2d(w, d_in_p, d_out_p, mm_dtype)
        w1_p = _prep2d(w1, d_out_p, d_bn_p, mm_dtype)
        w2_p = _prep2d(w2, d_bn_p, d_out_p, mm_dtype)
        b_p, b1_p, b2_p = _prep_bias(b, d_out_p), _prep_bias(b1, d_bn_p), _prep_bias(b2, d_out_p)

        flops = 2 * n_p * (d_in_p * d_out_p + 2 * d_out_p * d_bn_p)
        bytes_accessed = (n_p * d_in_p * mm_sz + weights_bytes + bias_bytes
                          + n_p * d_out_p * out_sz)

        def run_resident(wbuf):
            in_specs = [
                _spec((tm, d_in_p), lambda i: (i, 0), buffers=x_buffers),
                _spec((d_in_p, d_out_p), lambda i: (0, 0), buffers=wbuf),
                _spec((1, d_out_p), lambda i: (0, 0), buffers=wbuf),
                _spec((d_out_p, d_bn_p), lambda i: (0, 0), buffers=wbuf),
                _spec((1, d_bn_p), lambda i: (0, 0), buffers=wbuf),
                _spec((d_bn_p, d_out_p), lambda i: (0, 0), buffers=wbuf),
                _spec((1, d_out_p), lambda i: (0, 0), buffers=wbuf),
            ]
            return pl.pallas_call(
                partial(_fused_kernel, approximate=approximate_gelu),
                out_shape=jax.ShapeDtypeStruct((n_p, d_out_p), out_dtype),
                grid_spec=pltpu.PrefetchScalarGridSpec(
                    num_scalar_prefetch=0,
                    grid=grid,
                    in_specs=in_specs,
                    out_specs=pl.BlockSpec((tm, d_out_p), lambda i: (i, 0)),
                ),
                compiler_params=pltpu.CompilerParams(
                    dimension_semantics=("parallel",),   # row tiles -> v7x megacore
                    vmem_limit_bytes=budget,
                ),
                cost_estimate=pl.CostEstimate(
                    flops=flops, transcendentals=n_p * d_bn_p,
                    bytes_accessed=bytes_accessed),
            )(x_p, w_p, b_p, w1_p, b1_p, w2_p, b2_p)

        try:
            out_p = run_resident(1)      # weights/biases single-buffered (block never changes)
        except Exception:                # Buffered(1) unsupported -> default double-buffering
            out_p = run_resident(None)

        if n_p != n or d_out_p != d_out:
            out_p = out_p[:n, :d_out]
        return out_p

    # ----- Column-tiled path: stream W / b / W2 / b2 over d_out tiles -----
    if block_cols is None:
        tj = min(512, d_out_p)           # multiple of 256 preferred for v6e/v7x MXU
    else:
        tj = min(_round_up(block_cols, 128), d_out_p)
    d_out_pc = _round_up(d_out, tj)
    jt = d_out_pc // tj

    fixed1 = 2 * (d_in_p * tj + tj * d_bn_p) * mm_sz + (tj + d_bn_p) * 4 + margin
    per_row1 = (2 * d_in_p * mm_sz + 2 * tj * 4 + 2 * d_bn_p * 4
                + (tj + d_bn_p) * 4 + tj * mm_sz)
    fixed2 = 2 * d_bn_p * tj * mm_sz + tj * 4 + margin
    per_row2 = (2 * d_bn_p * 4 + 2 * tj * 4 + 2 * tj * out_sz + tj * 4 + d_bn_p * mm_sz)
    cap_rows = min((budget - fixed1) // per_row1 if budget > fixed1 else 8,
                   (budget - fixed2) // per_row2 if budget > fixed2 else 8)
    tm = _pick_tm(n, block_rows, cap_rows)
    n_p = _round_up(n, tm)
    grid = (n_p // tm, jt)

    x_p = _prep2d(x, n_p, d_in_p, mm_dtype)
    w_p = _prep2d(w, d_in_p, d_out_pc, mm_dtype)
    w1_p = _prep2d(w1, d_out_pc, d_bn_p, mm_dtype)
    w2_p = _prep2d(w2, d_bn_p, d_out_pc, mm_dtype)
    b_p, b1_p, b2_p = _prep_bias(b, d_out_pc), _prep_bias(b1, d_bn_p), _prep_bias(b2, d_out_pc)

    # Pass 1: h (f32, for an exact residual) and bottleneck activations a = GELU(hW1+b1).
    h_p, a_p = pl.pallas_call(
        partial(_down_kernel, approximate=approximate_gelu),
        out_shape=(jax.ShapeDtypeStruct((n_p, d_out_pc), jnp.float32),
                   jax.ShapeDtypeStruct((n_p, d_bn_p), jnp.float32)),
        grid_spec=pltpu.PrefetchScalarGridSpec(
            num_scalar_prefetch=0,
            grid=grid,
            in_specs=[
                pl.BlockSpec((tm, d_in_p), lambda i, j: (i, 0)),
                pl.BlockSpec((d_in_p, tj), lambda i, j: (0, j)),
                pl.BlockSpec((1, tj), lambda i, j: (0, j)),
                pl.BlockSpec((tj, d_bn_p), lambda i, j: (j, 0)),
                pl.BlockSpec((1, d_bn_p), lambda i, j: (0, 0)),
            ],
            out_specs=[
                pl.BlockSpec((tm, tj), lambda i, j: (i, j)),
                pl.BlockSpec((tm, d_bn_p), lambda i, j: (i, 0)),   # accumulator over j
            ],
        ),
        compiler_params=pltpu.CompilerParams(
            dimension_semantics=("parallel", "arbitrary"),
            vmem_limit_bytes=budget,
        ),
        cost_estimate=pl.CostEstimate(
            flops=2 * n_p * (d_in_p * d_out_pc + d_out_pc * d_bn_p),
            transcendentals=n_p * d_bn_p,
            bytes_accessed=(n_p * d_in_p * mm_sz + d_in_p * d_out_pc * mm_sz
                            + d_out_pc * d_bn_p * mm_sz
                            + n_p * d_out_pc * 4 + n_p * d_bn_p * 4)),
    )(x_p, w_p, b_p, w1_p, b1_p)

    # Pass 2: up-projection + residual, per d_out tile.
    out_p = pl.pallas_call(
        _up_kernel,
        out_shape=jax.ShapeDtypeStruct((n_p, d_out_pc), out_dtype),
        grid_spec=pltpu.PrefetchScalarGridSpec(
            num_scalar_prefetch=0,
            grid=grid,
            in_specs=[
                pl.BlockSpec((tm, d_bn_p), lambda i, j: (i, 0)),
                pl.BlockSpec((d_bn_p, tj), lambda i, j: (0, j)),
                pl.BlockSpec((1, tj), lambda i, j: (0, j)),
                pl.BlockSpec((tm, tj), lambda i, j: (i, j)),
            ],
            out_specs=pl.BlockSpec((tm, tj), lambda i, j: (i, j)),
        ),
        compiler_params=pltpu.CompilerParams(
            dimension_semantics=("parallel", "parallel"),
            vmem_limit_bytes=budget,
        ),
        cost_estimate=pl.CostEstimate(
            flops=2 * n_p * d_bn_p * d_out_pc,
            transcendentals=0,
            bytes_accessed=(n_p * d_bn_p * 4 + d_bn_p * d_out_pc * mm_sz
                            + n_p * d_out_pc * 4 + n_p * d_out_pc * out_sz)),
    )(a_p, w2_p, b2_p, h_p)

    if n_p != n or d_out_pc != d_out:
        out_p = out_p[:n, :d_out]
    return out_p


# ----------------------------------------------------------------------------------
# Reference + demo
# ----------------------------------------------------------------------------------
def _reference(x, w, b, w1, b1, w2, b2):
    h = x @ w + b
    z = jax.nn.gelu(h @ w1 + b1, approximate=False)
    return z @ w2 + b2 + h


if __name__ == "__main__":
    key = jax.random.PRNGKey(0)

    def uinit(k, shape, fan_in):
        bound = 1.0 / math.sqrt(fan_in)
        return jax.random.uniform(k, shape, jnp.float32, -bound, bound)

    def make_params(k, d_in, d_out, d_bn):
        kw, kb, kw1, kb1, kw2, kb2 = jax.random.split(k, 6)
        return (uinit(kw, (d_in, d_out), d_in), uinit(kb, (d_out,), d_in),
                uinit(kw1, (d_out, d_bn), d_out), uinit(kb1, (d_bn,), d_out),
                uinit(kw2, (d_bn, d_out), d_bn), uinit(kb2, (d_out,), d_bn))

    k1, k2, k3, kx1, kx2, kx3 = jax.random.split(key, 6)

    # 1) Small shapes consistent with AdaptedLinear(Linear(32, 32), bottleneck_dim=16);
    #    f32 matmul operands for exact parity with the f32 reference.
    x1 = jax.random.normal(kx1, (8, 32), jnp.float32)
    p1 = make_params(k1, 32, 32, 16)
    out1 = jax.block_until_ready(adapted_linear(x1, *p1, matmul_dtype=jnp.float32))
    ref1 = _reference(x1, *p1)
    assert out1.shape == (8, 32)
    assert jnp.allclose(out1, ref1, atol=1e-5, rtol=1e-5), "mismatch (small, f32)"

    # 2) Multiple row tiles + ragged row / feature padding (f32 operands).
    x2 = jax.random.normal(kx2, (300, 256), jnp.float32)
    p2 = make_params(k2, 256, 192, 48)
    out2 = jax.block_until_ready(
        adapted_linear(x2, *p2, block_rows=128, matmul_dtype=jnp.float32))
    ref2 = _reference(x2, *p2)
    assert out2.shape == (300, 192)
    assert jnp.allclose(out2, ref2, atol=1e-4, rtol=1e-4), "mismatch (tiled, f32)"

    # 3) Default bf16 MXU operands (f32 accumulation / epilogue): looser tolerance.
    out3 = jax.block_until_ready(adapted_linear(x2, *p2, block_rows=128))
    assert out3.shape == (300, 192)
    assert jnp.allclose(out3, ref2, atol=5e-2, rtol=5e-2), "mismatch (tiled, bf16)"

    # 4) Exercise the column-tiled (large d_out) path explicitly at small shapes.
    x3 = jax.random.normal(kx3, (64, 128), jnp.float32)
    p3 = make_params(k3, 128, 384, 32)
    out4 = jax.block_until_ready(
        adapted_linear(x3, *p3, matmul_dtype=jnp.float32,
                       force_column_tiled=True, block_cols=128))
    ref4 = _reference(x3, *p3)
    assert out4.shape == (64, 384)
    assert jnp.allclose(out4, ref4, atol=1e-4, rtol=1e-4), "mismatch (column-tiled, f32)"

    print("KERNEL_OK")
</pallas_src>

<mosaic_0001>
module attributes {stable_mosaic.version = 11 : i64} {
  func.func @_fused_kernel(%arg0: i32, %arg1: memref<8x128xf32, #tpu.memory_space<vmem>>, %arg2: memref<128x128xf32, #tpu.memory_space<vmem>>, %arg3: memref<1x128xf32, #tpu.memory_space<vmem>>, %arg4: memref<128x128xf32, #tpu.memory_space<vmem>>, %arg5: memref<1x128xf32, #tpu.memory_space<vmem>>, %arg6: memref<128x128xf32, #tpu.memory_space<vmem>>, %arg7: memref<1x128xf32, #tpu.memory_space<vmem>>, %arg8: memref<8x128xf32, #tpu.memory_space<vmem>>) attributes {dimension_semantics = [#tpu.dimension_semantics<parallel>], iteration_bounds = array<i64: 1>, scalar_prefetch = 0 : i64, scratch_operands = 0 : i64, tpu.core_type = #tpu.core_type<tc>, window_params = [{transform_indices = @transform_0, window_bounds = array<i64: 8, 128>}, {pipeline_mode = #tpu.pipeline_mode<synchronous>, transform_indices = @transform_1, window_bounds = array<i64: 128, 128>}, {pipeline_mode = #tpu.pipeline_mode<synchronous>, transform_indices = @transform_2, window_bounds = array<i64: 1, 128>}, {pipeline_mode = #tpu.pipeline_mode<synchronous>, transform_indices = @transform_3, window_bounds = array<i64: 128, 128>}, {pipeline_mode = #tpu.pipeline_mode<synchronous>, transform_indices = @transform_4, window_bounds = array<i64: 1, 128>}, {pipeline_mode = #tpu.pipeline_mode<synchronous>, transform_indices = @transform_5, window_bounds = array<i64: 128, 128>}, {pipeline_mode = #tpu.pipeline_mode<synchronous>, transform_indices = @transform_6, window_bounds = array<i64: 1, 128>}, {transform_indices = @transform_7, window_bounds = array<i64: 8, 128>}]} {
    %c0 = arith.constant 0 : index
    %c0_0 = arith.constant 0 : index
    %0 = vector.load %arg1[%c0, %c0_0] : memref<8x128xf32, #tpu.memory_space<vmem>>, vector<8x128xf32>
    %c0_1 = arith.constant 0 : index
    %c0_2 = arith.constant 0 : index
    %1 = vector.load %arg2[%c0_1, %c0_2] : memref<128x128xf32, #tpu.memory_space<vmem>>, vector<128x128xf32>
    %cst = arith.constant dense<0.000000e+00> : vector<8x128xf32>
    %2 = tpu.matmul %0, %1, %cst {dimension_numbers = #tpu.dot_dimension_numbers<[1], [0], [0], [1], [0, 0, 1, 1], [], []>} : vector<8x128xf32>, vector<128x128xf32>, vector<8x128xf32> -> vector<8x128xf32>
    %c0_3 = arith.constant 0 : index
    %c0_4 = arith.constant 0 : index
    %3 = vector.load %arg3[%c0_3, %c0_4] : memref<1x128xf32, #tpu.memory_space<vmem>>, vector<1x128xf32>
    %4 = vector.broadcast %3 : vector<1x128xf32> to vector<8x128xf32>
    %5 = arith.addf %2, %4 : vector<8x128xf32>
    %c0_5 = arith.constant 0 : index
    %c0_6 = arith.constant 0 : index
    %6 = vector.load %arg4[%c0_5, %c0_6] : memref<128x128xf32, #tpu.memory_space<vmem>>, vector<128x128xf32>
    %cst_7 = arith.constant dense<0.000000e+00> : vector<8x128xf32>
    %7 = tpu.matmul %5, %6, %cst_7 {dimension_numbers = #tpu.dot_dimension_numbers<[1], [0], [0], [1], [0, 0, 1, 1], [], []>} : vector<8x128xf32>, vector<128x128xf32>, vector<8x128xf32> -> vector<8x128xf32>
    %c0_8 = arith.constant 0 : index
    %c0_9 = arith.constant 0 : index
    %8 = vector.load %arg5[%c0_8, %c0_9] : memref<1x128xf32, #tpu.memory_space<vmem>>, vector<1x128xf32>
    %9 = vector.broadcast %8 : vector<1x128xf32> to vector<8x128xf32>
    %10 = arith.addf %7, %9 : vector<8x128xf32>
    %cst_10 = arith.constant 5.000000e-01 : f32
    %11 = vector.broadcast %cst_10 : f32 to vector<8x128xf32>
    %12 = arith.mulf %11, %10 : vector<8x128xf32>
    %cst_11 = arith.constant 0.707106769 : f32
    %13 = vector.broadcast %cst_11 : f32 to vector<8x128xf32>
    %14 = arith.mulf %10, %13 : vector<8x128xf32>
    %15 = math.erf %14 : vector<8x128xf32>
    %cst_12 = arith.constant 1.000000e+00 : f32
    %16 = vector.broadcast %cst_12 : f32 to vector<8x128xf32>
    %17 = arith.addf %16, %15 : vector<8x128xf32>
    %18 = arith.mulf %12, %17 : vector<8x128xf32>
    %c0_13 = arith.constant 0 : index
    %c0_14 = arith.constant 0 : index
    %19 = vector.load %arg6[%c0_13, %c0_14] : memref<128x128xf32, #tpu.memory_space<vmem>>, vector<128x128xf32>
    %cst_15 = arith.constant dense<0.000000e+00> : vector<8x128xf32>
    %20 = tpu.matmul %18, %19, %cst_15 {dimension_numbers = #tpu.dot_dimension_numbers<[1], [0], [0], [1], [0, 0, 1, 1], [], []>} : vector<8x128xf32>, vector<128x128xf32>, vector<8x128xf32> -> vector<8x128xf32>
    %c0_16 = arith.constant 0 : index
    %c0_17 = arith.constant 0 : index
    %21 = vector.load %arg7[%c0_16, %c0_17] : memref<1x128xf32, #tpu.memory_space<vmem>>, vector<1x128xf32>
    %22 = vector.broadcast %21 : vector<1x128xf32> to vector<8x128xf32>
    %23 = arith.addf %20, %22 : vector<8x128xf32>
    %24 = arith.addf %23, %5 : vector<8x128xf32>
    %c0_18 = arith.constant 0 : index
    %c0_19 = arith.constant 0 : index
    %25 = vector.load %arg8[%c0_18, %c0_19] : memref<8x128xf32, #tpu.memory_space<vmem>>, vector<8x128xf32>
    tpu.vector_store %arg8[%c0_18, %c0_19], %24 {strides = array<i32>} : memref<8x128xf32, #tpu.memory_space<vmem>>, vector<8x128xf32>,
    return
  }
  func.func @transform_0(%arg0: i32) -> (i32, i32) {
    %c0_i32 = arith.constant 0 : i32
    %c0_i32_0 = arith.constant 0 : i32
    return %arg0, %c0_i32 : i32, i32
  }
  func.func @transform_1(%arg0: i32) -> (i32, i32) {
    %c0_i32 = arith.constant 0 : i32
    %c0_i32_0 = arith.constant 0 : i32
    %c0_i32_1 = arith.constant 0 : i32
    return %c0_i32, %c0_i32_0 : i32, i32
  }
  func.func @transform_2(%arg0: i32) -> (i32, i32) {
    %c0_i32 = arith.constant 0 : i32
    %c0_i32_0 = arith.constant 0 : i32
    %c0_i32_1 = arith.constant 0 : i32
    return %c0_i32, %c0_i32_0 : i32, i32
  }
  func.func @transform_3(%arg0: i32) -> (i32, i32) {
    %c0_i32 = arith.constant 0 : i32
    %c0_i32_0 = arith.constant 0 : i32
    %c0_i32_1 = arith.constant 0 : i32
    return %c0_i32, %c0_i32_0 : i32, i32
  }
  func.func @transform_4(%arg0: i32) -> (i32, i32) {
    %c0_i32 = arith.constant 0 : i32
    %c0_i32_0 = arith.constant 0 : i32
    %c0_i32_1 = arith.constant 0 : i32
    return %c0_i32, %c0_i32_0 : i32, i32
  }
  func.func @transform_5(%arg0: i32) -> (i32, i32) {
    %c0_i32 = arith.constant 0 : i32
    %c0_i32_0 = arith.constant 0 : i32
    %c0_i32_1 = arith.constant 0 : i32
    return %c0_i32, %c0_i32_0 : i32, i32
  }
  func.func @transform_6(%arg0: i32) -> (i32, i32) {
    %c0_i32 = arith.constant 0 : i32
    %c0_i32_0 = arith.constant 0 : i32
    %c0_i32_1 = arith.constant 0 : i32
    return %c0_i32, %c0_i32_0 : i32, i32
  }
  func.func @transform_7(%arg0: i32) -> (i32, i32) {
    %c0_i32 = arith.constant 0 : i32
    %c0_i32_0 = arith.constant 0 : i32
    return %arg0, %c0_i32 : i32, i32
  }
}

module attributes {stable_mosaic.version = 11 : i64} {
  func.func @_fused_kernel(%arg0: i32, %arg1: memref<8x128xf32, #tpu.memory_space<vmem>>, %arg2: memref<128x128xf32, #tpu.memory_space<vmem>>, %arg3: memref<1x128xf32, #tpu.memory_space<vmem>>, %arg4: memref<128x128xf32, #tpu.memory_space<vmem>>, %arg5: memref<1x128xf32, #tpu.memory_space<vmem>>, %arg6: memref<128x128xf32, #tpu.memory_space<vmem>>, %arg7: memref<1x128xf32, #tpu.memory_space<vmem>>, %arg8: memref<8x128xf32, #tpu.memory_space<vmem>>) attributes {dimension_semantics = [#tpu.dimension_semantics<parallel>], iteration_bounds = array<i64: 1>, scalar_prefetch = 0 : i64, scratch_operands = 0 : i64, tpu.core_type = #tpu.core_type<tc>, window_params = [{transform_indices = @transform_0, window_bounds = array<i64: 8, 128>}, {pipeline_mode = #tpu.pipeline_mode<synchronous>, transform_indices = @transform_1, window_bounds = array<i64: 128, 128>}, {pipeline_mode = #tpu.pipeline_mode<synchronous>, transform_indices = @transform_2, window_bounds = array<i64: 1, 128>}, {pipeline_mode = #tpu.pipeline_mode<synchronous>, transform_indices = @transform_3, window_bounds = array<i64: 128, 128>}, {pipeline_mode = #tpu.pipeline_mode<synchronous>, transform_indices = @transform_4, window_bounds = array<i64: 1, 128>}, {pipeline_mode = #tpu.pipeline_mode<synchronous>, transform_indices = @transform_5, window_bounds = array<i64: 128, 128>}, {pipeline_mode = #tpu.pipeline_mode<synchronous>, transform_indices = @transform_6, window_bounds = array<i64: 1, 128>}, {transform_indices = @transform_7, window_bounds = array<i64: 8, 128>}]} {
    %c0 = arith.constant 0 : index
    %c0_0 = arith.constant 0 : index
    %0 = vector.load %arg1[%c0, %c0_0] : memref<8x128xf32, #tpu.memory_space<vmem>>, vector<8x128xf32>
    %c0_1 = arith.constant 0 : index
    %c0_2 = arith.constant 0 : index
    %1 = vector.load %arg2[%c0_1, %c0_2] : memref<128x128xf32, #tpu.memory_space<vmem>>, vector<128x128xf32>
    %cst = arith.constant dense<0.000000e+00> : vector<8x128xf32>
    %2 = tpu.matmul %0, %1, %cst {dimension_numbers = #tpu.dot_dimension_numbers<[1], [0], [0], [1], [0, 0, 1, 1], [], []>} : vector<8x128xf32>, vector<128x128xf32>, vector<8x128xf32> -> vector<8x128xf32>
    %c0_3 = arith.constant 0 : index
    %c0_4 = arith.constant 0 : index
    %3 = vector.load %arg3[%c0_3, %c0_4] : memref<1x128xf32, #tpu.memory_space<vmem>>, vector<1x128xf32>
    %4 = vector.broadcast %3 : vector<1x128xf32> to vector<8x128xf32>
    %5 = arith.addf %2, %4 : vector<8x128xf32>
    %c0_5 = arith.constant 0 : index
    %c0_6 = arith.constant 0 : index
    %6 = vector.load %arg4[%c0_5, %c0_6] : memref<128x128xf32, #tpu.memory_space<vmem>>, vector<128x128xf32>
    %cst_7 = arith.constant dense<0.000000e+00> : vector<8x128xf32>
    %7 = tpu.matmul %5, %6, %cst_7 {dimension_numbers = #tpu.dot_dimension_numbers<[1], [0], [0], [1], [0, 0, 1, 1], [], []>} : vector<8x128xf32>, vector<128x128xf32>, vector<8x128xf32> -> vector<8x128xf32>
    %c0_8 = arith.constant 0 : index
    %c0_9 = arith.constant 0 : index
    %8 = vector.load %arg5[%c0_8, %c0_9] : memref<1x128xf32, #tpu.memory_space<vmem>>, vector<1x128xf32>
    %9 = vector.broadcast %8 : vector<1x128xf32> to vector<8x128xf32>
    %10 = arith.addf %7, %9 : vector<8x128xf32>
    %cst_10 = arith.constant 5.000000e-01 : f32
    %11 = vector.broadcast %cst_10 : f32 to vector<8x128xf32>
    %12 = arith.mulf %11, %10 : vector<8x128xf32>
    %cst_11 = arith.constant 0.707106769 : f32
    %13 = vector.broadcast %cst_11 : f32 to vector<8x128xf32>
    %14 = arith.mulf %10, %13 : vector<8x128xf32>
    %15 = math.erf %14 : vector<8x128xf32>
    %cst_12 = arith.constant 1.000000e+00 : f32
    %16 = vector.broadcast %cst_12 : f32 to vector<8x128xf32>
    %17 = arith.addf %16, %15 : vector<8x128xf32>
    %18 = arith.mulf %12, %17 : vector<8x128xf32>
    %c0_13 = arith.constant 0 : index
    %c0_14 = arith.constant 0 : index
    %19 = vector.load %arg6[%c0_13, %c0_14] : memref<128x128xf32, #tpu.memory_space<vmem>>, vector<128x128xf32>
    %cst_15 = arith.constant dense<0.000000e+00> : vector<8x128xf32>
    %20 = tpu.matmul %18, %19, %cst_15 {dimension_numbers = #tpu.dot_dimension_numbers<[1], [0], [0], [1], [0, 0, 1, 1], [], []>} : vector<8x128xf32>, vector<128x128xf32>, vector<8x128xf32> -> vector<8x128xf32>
    %c0_16 = arith.constant 0 : index
    %c0_17 = arith.constant 0 : index
    %21 = vector.load %arg7[%c0_16, %c0_17] : memref<1x128xf32, #tpu.memory_space<vmem>>, vector<1x128xf32>
    %22 = vector.broadcast %21 : vector<1x128xf32> to vector<8x128xf32>
    %23 = arith.addf %20, %22 : vector<8x128xf32>
    %24 = arith.addf %23, %5 : vector<8x128xf32>
    %c0_18 = arith.constant 0 : index
    %c0_19 = arith.constant 0 : index
    %25 = vector.load %arg8[%c0_18, %c0_19] : memref<8x128xf32, #tpu.memory_space<vmem>>, vector<8x128xf32>
    tpu.vector_store %arg8[%c0_18, %c0_19], %24 {strides = array<i32>} : memref<8x128xf32, #tpu.memory_space<vmem>>, vector<8x128xf32>,
    return
  }
  func.func @transform_0(%arg0: i32) -> (i32, i32) {
    %c0_i32 = arith.constant 0 : i32
    %c0_i32_0 = arith.constant 0 : i32
    return %arg0, %c0_i32 : i32, i32
  }
  func.func @transform_1(%arg0: i32) -> (i32, i32) {
    %c0_i32 = arith.constant 0 : i32
    %c0_i32_0 = arith.constant 0 : i32
    %c0_i32_1 = arith.constant 0 : i32
    return %c0_i32, %c0_i32_0 : i32, i32
  }
  func.func @transform_2(%arg0: i32) -> (i32, i32) {
    %c0_i32 = arith.constant 0 : i32
    %c0_i32_0 = arith.constant 0 : i32
    %c0_i32_1 = arith.constant 0 : i32
    return %c0_i32, %c0_i32_0 : i32, i32
  }
  func.func @transform_3(%arg0: i32) -> (i32, i32) {
    %c0_i32 = arith.constant 0 : i32
    %c0_i32_0 = arith.constant 0 : i32
    %c0_i32_1 = arith.constant 0 : i32
    return %c0_i32, %c0_i32_0 : i32, i32
  }
  func.func @transform_4(%arg0: i32) -> (i32, i32) {
    %c0_i32 = arith.constant 0 : i32
    %c0_i32_0 = arith.constant 0 : i32
    %c0_i32_1 = arith.constant 0 : i32
    return %c0_i32, %c0_i32_0 : i32, i32
  }
  func.func @transform_5(%arg0: i32) -> (i32, i32) {
    %c0_i32 = arith.constant 0 : i32
    %c0_i32_0 = arith.constant 0 : i32
    %c0_i32_1 = arith.constant 0 : i32
    return %c0_i32, %c0_i32_0 : i32, i32
  }
  func.func @transform_6(%arg0: i32) -> (i32, i32) {
    %c0_i32 = arith.constant 0 : i32
    %c0_i32_0 = arith.constant 0 : i32
    %c0_i32_1 = arith.constant 0 : i32
    return %c0_i32, %c0_i32_0 : i32, i32
  }
  func.func @transform_7(%arg0: i32) -> (i32, i32) {
    %c0_i32 = arith.constant 0 : i32
    %c0_i32_0 = arith.constant 0 : i32
    return %arg0, %c0_i32 : i32, i32
  }
}

</mosaic_0001>

<bundles_post_ra>
// kernel: tpu_custom_call.1
= control target key start
LH: loop header
LB: loop body
LE: loop exit
PB: predicated region body
PF: predicated region fallthrough
CT: control target
= control target key end

     0   :  { %12 = vsyncpa [#allocation3], 0  ;;  %s903_s0 = inlined_call_operand.hbm [shape: f32[8,128], index: 0, kind: input, shape index: {}]   ;;  %s904_s1 = inlined_call_operand.hbm [shape: f32[128,128], index: 1, kind: input, shape index: {}]   ;;  %s905_s2 = inlined_call_operand.vmem [shape: f32[1,128], index: 2, kind: input, shape index: {}]   ;;  %s906_s3 = inlined_call_operand.hbm [shape: f32[128,128], index: 3, kind: input, shape index: {}]   ;;  %s907_s4 = inlined_call_operand.vmem [shape: f32[1,128], index: 4, kind: input, shape index: {}]   ;;  %s908_s5 = inlined_call_operand.hbm [shape: f32[128,128], index: 5, kind: input, shape index: {}]   ;;  %s909_s6 = inlined_call_operand.vmem [shape: f32[1,128], index: 6, kind: input, shape index: {}]   ;;  %s910_s7 = inlined_call_operand.hbm [shape: f32[8,128], index: 7, kind: output, shape index: {}]  }
   0x1   :  { %13 = vsyncpa [#allocation6], 0 }
   0x2   :  { %14 = vsyncpa [#allocation9], 0 }
   0x3   :  { %15 = vsyncpa [#allocation4], 0  ;;  %s745_s24 = smov [#allocation5]   ;;  %s627_s28 = scalar_lea.hbm %s904_s1, 2048 }
   0x4   :  { %s31_s25 = sshll.u32 %s745_s24, 4  ;;  %p628_p0 = scmp.ne.s32.totalorder %s904_s1, %s627_s28  ;;  %s32_s25 = int_to_ptr.vmem [resolvable:$true] %s31_s25 }
   0x5   :  { %p631_p1 = scmp.lt.u32.totalorder %s627_s28, %s904_s1 }
   0x7   :  { %p633_p2 = pnand %p631_p1, %p628_p0 }
   0x9   :  { %636 = shalt.err (!%p633_p2)
}
   0xa   :  { %s637_s10 = scalar_lea.vmem %s32_s25, 2048  ;;  %p642_p4 = scmp.lt.s32.totalorder %s32_s25, %s32_s25 }
   0xb   :  { %p638_p3 = scmp.ne.s32.totalorder %s32_s25, %s637_s10  ;;  %p643_p5 = scmp.lt.s32.totalorder %s637_s10, %s637_s10 }
   0xd   :  { %p644_p6 = por %p643_p5, %p642_p4 }
   0xf   :  { %p645_p7 = pnand %p644_p6, %p638_p3 }
  0x11   :  { %648 = shalt.err (!%p645_p7)
}
  0x12   :  { %s746_s11 = smov 128   ;;  %s747_s12 = smov 8  }
  0x13   :  { %37 = dma.hbm_to_vmem [thread:$0]  %s904_s1, 2048, %s32_s25, [#allocation6], %s746_s11, %s746_s11, %s747_s12  }
  0x14   :  { %s748_s15 = smov [#allocation2]   ;;  %s749_s17 = smov [#allocation7]  }
  0x15   :  { %s22_s16 = sshll.u32 %s748_s15, 4  ;;  %s45_s18 = sshll.u32 %s749_s17, 4  ;;  %s23_s16 = int_to_ptr.vmem [resolvable:$true] %s22_s16  ;;  %s46_s18 = int_to_ptr.vmem [resolvable:$true] %s45_s18 }
  0x16   :  { %s649_s21 = scalar_lea.hbm %s903_s0, 128 }
  0x17   :  { %p650_p8 = scmp.ne.s32.totalorder %s903_s0, %s649_s21  ;;  %p653_p9 = scmp.lt.u32.totalorder %s649_s21, %s903_s0 }
  0x19   :  { %p655_p10 = pnand %p653_p9, %p650_p8 }
  0x1b   :  { %658 = shalt.err (!%p655_p10)
}
  0x1c   :  { %s659_s1 = scalar_lea.vmem %s23_s16, 128  ;;  %p664_p12 = scmp.lt.s32.totalorder %s23_s16, %s23_s16 }
  0x1d   :  { %p660_p11 = scmp.ne.s32.totalorder %s23_s16, %s659_s1  ;;  %p665_p13 = scmp.lt.s32.totalorder %s659_s1, %s659_s1 }
  0x1f   :  { %p666_p0 = por %p665_p13, %p664_p12 }
  0x21   :  { %p667_p1 = pnand %p666_p0, %p660_p11 }
  0x23   :  { %670 = shalt.err (!%p667_p1)
}
  0x24   :  { %25 = dma.hbm_to_vmem [thread:$0]  %s903_s0, 128, %s23_s16, [#allocation3]  }
  0x25   :  { %s671_s30 = scalar_lea.hbm %s906_s3, 2048 }
  0x26   :  { %p672_p2 = scmp.ne.s32.totalorder %s906_s3, %s671_s30  ;;  %p675_p3 = scmp.lt.u32.totalorder %s671_s30, %s906_s3 }
  0x28   :  { %p677_p4 = pnand %p675_p3, %p672_p2 }
  0x2a   :  { %680 = shalt.err (!%p677_p4)
}
  0x2b   :  { %s681_s14 = scalar_lea.vmem %s46_s18, 2048  ;;  %p686_p6 = scmp.lt.s32.totalorder %s46_s18, %s46_s18 }
  0x2c   :  { %p682_p5 = scmp.ne.s32.totalorder %s46_s18, %s681_s14  ;;  %p687_p7 = scmp.lt.s32.totalorder %s681_s14, %s681_s14 }
  0x2e   :  { %p688_p8 = por %p687_p7, %p686_p6 }
  0x30   :  { %p689_p9 = pnand %p688_p8, %p682_p5 }
  0x32   :  { %692 = shalt.err (!%p689_p9)
}
  0x33   :  { %51 = dma.hbm_to_vmem [thread:$0]  %s906_s3, 2048, %s46_s18, [#allocation6], %s746_s11, %s746_s11, %s747_s12  }
  0x34   :  { %s750_s16 = smov [#allocation8]   ;;  %s693_s21 = scalar_lea.hbm %s908_s5, 2048 }
  0x35   :  { %s59_s17 = sshll.u32 %s750_s16, 4  ;;  %p694_p10 = scmp.ne.s32.totalorder %s908_s5, %s693_s21  ;;  %s60_s17 = int_to_ptr.vmem [resolvable:$true] %s59_s17 }
  0x36   :  { %p697_p11 = scmp.lt.u32.totalorder %s693_s21, %s908_s5 }
  0x38   :  { %p699_p12 = pnand %p697_p11, %p694_p10 }
  0x3a   :  { %702 = shalt.err (!%p699_p12)
}
  0x3b   :  { %s703_s1 = scalar_lea.vmem %s60_s17, 2048  ;;  %p708_p0 = scmp.lt.s32.totalorder %s60_s17, %s60_s17 }
  0x3c   :  { %p704_p13 = scmp.ne.s32.totalorder %s60_s17, %s703_s1  ;;  %p709_p1 = scmp.lt.s32.totalorder %s703_s1, %s703_s1 }
  0x3e   :  { %p710_p2 = por %p709_p1, %p708_p0 }
  0x40   :  { %p711_p3 = pnand %p710_p2, %p704_p13 }
  0x42   :  { %714 = shalt.err (!%p711_p3)
}
  0x43   :  { %65 = dma.hbm_to_vmem [thread:$0]  %s908_s5, 2048, %s60_s17, [#allocation9], %s746_s11, %s746_s11, %s747_s12  }
  0x44   :  { %737 = dma.done.wait [#allocation3], 128  }
  0x45   :  { %738 = vsyncadd [#allocation3], 4294967168 }
  0x46   :  { %739 = dma.done.wait [#allocation6], 4096  }
  0x47   :  { %740 = vsyncadd [#allocation6], 4294963200 }
  0x48   :  { %741 = dma.done.wait [#allocation9], 2048  }
  0x49   :  { %742 = vsyncadd [#allocation9], 4294965248  ;;  %v751_v0 = vmov 0.0|0.0   ;;  %vm752_vm0 = vmmov 0   ;;  %v753_v1 = vmov 0.0   ;;  %v81_v2 = vld [vmem:[#allocation5] sm:$0xff] }
  0x4a   :  { %543 = vmatprep.subr.bf16.mxu0 %v751_v0  ;;  %470 = vmatprep.mubr.msk.f32.mxu0 %vm752_vm0, %v753_v1  ;;  %v82_v3 = vld [vmem:[#allocation5 + $0x8] sm:$0xff]  ;;  %v83_v4 = vld [vmem:[#allocation5 + $0x10] sm:$0xff]  ;;  %v84_v6 = vld [vmem:[#allocation5 + $0x18] sm:$0xff]  ;;  %s754_s28 = smov [#allocation10]  }
  0x4b   :  { %567 = vmatprep.subr.bf16.mxu1 %v751_v0  ;;  %505 = vmatprep.mubr.msk.f32.mxu1 %vm752_vm0, %v753_v1  ;;  %v544_v5 = vpack.c.bf16 %v82_v3, %v81_v2  ;;  %v547_v7 = vpack.c.bf16 %v84_v6, %v83_v4  ;;  %v85_v8 = vld [vmem:[#allocation5 + $0x20] sm:$0xff]  ;;  %v86_v9 = vld [vmem:[#allocation5 + $0x28] sm:$0xff]  ;;  %v176_v12 = vld [vmem:[#allocation7 + $0x10] sm:$0xff]  ;;  %s373_s29 = sshll.u32 %s754_s28, 4  ;;  %s374_s29 = int_to_ptr.vmem [resolvable:$true] %s373_s29 }
  0x4c   :  { %v174_v10 = vld [vmem:[#allocation7] sm:$0xff]  ;;  %v175_v11 = vld [vmem:[#allocation7 + $0x8] sm:$0xff]  ;;  %v177_v13 = vld [vmem:[#allocation7 + $0x18] sm:$0xff]  ;;  %v550_v14 = vpack.c.bf16 %v86_v9, %v85_v8  ;;  %p720_p5 = scmp.lt.s32.totalorder %s374_s29, %s374_s29 }
  0x4d   :  { %545 = vmatpush3.bf16.msra.mxu0 %v544_v5  ;;  %v568_v15 = vpack.c.bf16 %v175_v11, %v174_v10  ;;  %v87_v16 = vld [vmem:[#allocation5 + $0x30] sm:$0xff]  ;;  %v88_v17 = vld [vmem:[#allocation5 + $0x38] sm:$0xff]  ;;  %v571_v18 = vpack.c.bf16 %v177_v13, %v176_v12  ;;  %v178_v19 = vld [vmem:[#allocation7 + $0x20] sm:$0xff] }
  0x4e   :  { %546 = vmatprep.subr.bf16.mxu0 %v751_v0  ;;  %v179_v20 = vld [vmem:[#allocation7 + $0x28] sm:$0xff]  ;;  %v553_v21 = vpack.c.bf16 %v88_v17, %v87_v16  ;;  %v89_v22 = vld [vmem:[#allocation5 + $0x40] sm:$0xff]  ;;  %v180_v25 = vld [vmem:[#allocation7 + $0x30] sm:$0xff] }
  0x4f   :  { %569 = vmatpush3.bf16.msra.mxu1 %v568_v15  ;;  %v90_v23 = vld [vmem:[#allocation5 + $0x48] sm:$0xff]  ;;  %v574_v24 = vpack.c.bf16 %v179_v20, %v178_v19  ;;  %v181_v26 = vld [vmem:[#allocation7 + $0x38] sm:$0xff]  ;;  %v91_v28 = vld [vmem:[#allocation5 + $0x50] sm:$0xff] }
  0x50   :  { %570 = vmatprep.subr.bf16.mxu1 %v751_v0  ;;  %v556_v27 = vpack.c.bf16 %v90_v23, %v89_v22  ;;  %v92_v29 = vld [vmem:[#allocation5 + $0x58] sm:$0xff]  ;;  %v577_v30 = vpack.c.bf16 %v181_v26, %v180_v25  ;;  %v182_v31 = vld [vmem:[#allocation7 + $0x40] sm:$0xff]  ;;  %v183_v32 = vld [vmem:[#allocation7 + $0x48] sm:$0xff] }
  0x51   :  { %548 = vmatpush3.bf16.msra.mxu0 %v547_v7  ;;  %v559_v33 = vpack.c.bf16 %v92_v29, %v91_v28  ;;  %v93_v34 = vld [vmem:[#allocation5 + $0x60] sm:$0xff]  ;;  %v94_v35 = vld [vmem:[#allocation5 + $0x68] sm:$0xff]  ;;  %v580_v36 = vpack.c.bf16 %v183_v32, %v182_v31  ;;  %v184_v37 = vld [vmem:[#allocation7 + $0x50] sm:$0xff] }
  0x52   :  { %549 = vmatprep.subr.bf16.mxu0 %v751_v0  ;;  %v185_v38 = vld [vmem:[#allocation7 + $0x58] sm:$0xff]  ;;  %v562_v39 = vpack.c.bf16 %v94_v35, %v93_v34  ;;  %v95_v40 = vld [vmem:[#allocation5 + $0x70] sm:$0xff]  ;;  %v186_v43 = vld [vmem:[#allocation7 + $0x60] sm:$0xff] }
  0x53   :  { %572 = vmatpush3.bf16.msra.mxu1 %v571_v18  ;;  %v96_v41 = vld [vmem:[#allocation5 + $0x78] sm:$0xff]  ;;  %v583_v42 = vpack.c.bf16 %v185_v38, %v184_v37  ;;  %v187_v44 = vld [vmem:[#allocation7 + $0x68] sm:$0xff]  ;;  %v188_v48 = vld [vmem:[#allocation7 + $0x70] sm:$0xff] }
  0x54   :  { %573 = vmatprep.subr.bf16.mxu1 %v751_v0  ;;  %v565_v45 = vpack.c.bf16 %v96_v41, %v95_v40  ;;  %v586_v46 = vpack.c.bf16 %v187_v44, %v186_v43  ;;  %v80_v47 = vld [vmem:[#allocation2] sm:$0xff]  ;;  %v272_v51 = vld [vmem:[#allocation8] sm:$0xff]  ;;  %v273_v52 = vld [vmem:[#allocation8 + $0x8] sm:$0xff] }
  0x55   :  { %551 = vmatpush3.bf16.msra.mxu0 %v550_v14  ;;  %v189_v49 = vld [vmem:[#allocation7 + $0x78] sm:$0xff]  ;;  %v274_v53 = vld [vmem:[#allocation8 + $0x10] sm:$0xff]  ;;  %v592_v54 = vpack.c.bf16 %v273_v52, %v272_v51  ;;  %v276_v57 = vld [vmem:[#allocation8 + $0x20] sm:$0xff] }
  0x56   :  { %552 = vmatprep.subr.bf16.mxu0 %v751_v0  ;;  %v589_v50 = vpack.c.bf16 %v189_v49, %v188_v48  ;;  %v275_v55 = vld [vmem:[#allocation8 + $0x18] sm:$0xff]  ;;  %v277_v58 = vld [vmem:[#allocation8 + $0x28] sm:$0xff]  ;;  %v280_v4 = vld [vmem:[#allocation8 + $0x40] sm:$0xff] }
  0x57   :  { %575 = vmatpush3.bf16.msra.mxu1 %v574_v24  ;;  %v595_v56 = vpack.c.bf16 %v275_v55, %v274_v53  ;;  %v598_v59 = vpack.c.bf16 %v277_v58, %v276_v57  ;;  %v384_v60 = vld [vmem:[%s905_s2] ss:$0 sm:$0xff]  ;;  %v281_v5 = vld [vmem:[#allocation8 + $0x48] sm:$0xff]  ;;  %v282_v7 = vld [vmem:[#allocation8 + $0x50] sm:$0xff] }
  0x58   :  { %576 = vmatprep.subr.bf16.mxu1 %v751_v0  ;;  %v279_v2 = vld [vmem:[#allocation8 + $0x38] sm:$0xff]  ;;  %v604_v6 = vpack.c.bf16 %v281_v5, %v280_v4  ;;  %v284_v10 = vld [vmem:[#allocation8 + $0x60] sm:$0xff]  ;;  %v285_v11 = vld [vmem:[#allocation8 + $0x68] sm:$0xff] }
  0x59   :  { %554 = vmatpush3.bf16.msra.mxu0 %v553_v21  ;;  %v283_v8 = vld [vmem:[#allocation8 + $0x58] sm:$0xff]  ;;  %v610_v12 = vpack.c.bf16 %v285_v11, %v284_v10  ;;  %v286_v13 = vld [vmem:[#allocation8 + $0x70] sm:$0xff] }
  0x5a   :  { %555 = vmatprep.subr.bf16.mxu0 %v751_v0  ;;  %v607_v9 = vpack.c.bf16 %v283_v8, %v282_v7  ;;  %v287_v14 = vld [vmem:[#allocation8 + $0x78] sm:$0xff] }
  0x5b   :  { %578 = vmatpush3.bf16.msra.mxu1 %v577_v30  ;;  %v613_v15 = vpack.c.bf16 %v287_v14, %v286_v13  ;;  %v385_v16 = vld [vmem:[%s907_s4] ss:$0 sm:$0xff]  ;;  %s715_s4 = scalar_lea.vmem %s374_s29, 128 }
  0x5c   :  { %579 = vmatprep.subr.bf16.mxu1 %v751_v0  ;;  %p716_p4 = scmp.ne.s32.totalorder %s374_s29, %s715_s4  ;;  %p721_p6 = scmp.lt.s32.totalorder %s715_s4, %s715_s4 }
  0x5d   :  { %557 = vmatpush3.bf16.msra.mxu0 %v556_v27 }
  0x5e   :  { %558 = vmatprep.subr.bf16.mxu0 %v751_v0  ;;  %p722_p7 = por %p721_p6, %p720_p5 }
  0x5f   :  { %581 = vmatpush3.bf16.msra.mxu1 %v580_v36 }
  0x60   :  { %582 = vmatprep.subr.bf16.mxu1 %v751_v0  ;;  %p723_p8 = pnand %p722_p7, %p716_p4 }
  0x61   :  { %560 = vmatpush3.bf16.msra.mxu0 %v559_v33 }
  0x62   :  { %561 = vmatprep.subr.bf16.mxu0 %v751_v0 }
  0x63   :  { %584 = vmatpush3.bf16.msra.mxu1 %v583_v42 }
  0x64   :  { %585 = vmatprep.subr.bf16.mxu1 %v751_v0 }
  0x65   :  { %563 = vmatpush3.bf16.msra.mxu0 %v562_v39 }
  0x66   :  { %564 = vmatprep.subr.bf16.mxu0 %v751_v0 }
  0x67   :  { %587 = vmatpush3.bf16.msra.mxu1 %v586_v46 }
  0x68   :  { %588 = vmatprep.subr.bf16.mxu1 %v751_v0 }
  0x69   :  { %566 = vmatpush3.bf16.msra.mxu0 %v565_v45 }
  0x6a   :  { %591 = vmatprep.subr.bf16.mxu0 %v751_v0 }
  0x6b   :  { %590 = vmatpush3.bf16.msra.mxu1 %v589_v50 }
  0x6c   :  { %471 = vmatmul.mubr.f32.vlgmr.msra.gmra.mrb[0].mxu0 %v80_v47 }
  0x6d   :  { %540 = vmatprep.mubr.msk.f32.mxu0 %vm752_vm0, %v753_v1  ;;  %593 = vmatpush3.bf16.msra.mxu0 %v592_v54  ;;  %v278_v1 = vld [vmem:[#allocation8 + $0x30] sm:$0xff] }
  0x6e   :  { %594 = vmatprep.subr.bf16.mxu0 %v751_v0  ;;  %v601_v3 = vpack.c.bf16 %v279_v2, %v278_v1 }
  0x71   :  { %596 = vmatpush3.bf16.msra.mxu0 %v595_v56 }
  0x72   :  { %597 = vmatprep.subr.bf16.mxu0 %v751_v0 }
  0x75   :  { %599 = vmatpush3.bf16.msra.mxu0 %v598_v59 }
  0x76   :  { %600 = vmatprep.subr.bf16.mxu0 %v751_v0 }
  0x79   :  { %602 = vmatpush3.bf16.msra.mxu0 %v601_v3 }
  0x7a   :  { %603 = vmatprep.subr.bf16.mxu0 %v751_v0 }
  0x7d   :  { %605 = vmatpush3.bf16.msra.mxu0 %v604_v6 }
  0x7e   :  { %606 = vmatprep.subr.bf16.mxu0 %v751_v0 }
  0x81   :  { %608 = vmatpush3.bf16.msra.mxu0 %v607_v9 }
  0x82   :  { %609 = vmatprep.subr.bf16.mxu0 %v751_v0 }
  0x85   :  { %611 = vmatpush3.bf16.msra.mxu0 %v610_v12 }
  0x86   :  { %612 = vmatprep.subr.bf16.mxu0 %v751_v0  ;;  %v386_v0 = vld [vmem:[%s909_s6] ss:$0 sm:$0xff] }
  0x89   :  { %614 = vmatpush3.bf16.msra.mxu0 %v613_v15 }
 0x13f   :  { %v170_v61 = vpop.f32.mrb[0].mxu0 }
 0x140   :  { %v171_v62 = vadd.f32 %v384_v60, %v170_v61  ;;  %v472_v63 = vpop.f32.mrb[1].mxu0 }
 0x142   :  { %506 = vmatmul.mubr.f32.vlgmr.msra.gmra.mrb[0].mxu1 %v171_v62 }
 0x215   :  { %v263_v17 = vpop.f32.mrb[0].mxu1 }
 0x216   :  { %v264_v18 = vadd.f32 %v385_v16, %v263_v17  ;;  %v507_v19 = vpop.f32.mrb[1].mxu1 }
 0x218   :  { %v268_v20 = vmul.f32 0.70710677, %v264_v18  ;;  %v267_v22 = vmul.f32 0.5, %v264_v18 }
 0x21a   :  { %625 = verf.f32 %v268_v20 }
 0x224   :  { %v626_v21 = vpop.eup %625 }
 0x225   :  { %v270_v23 = vadd.f32 1.0, %v626_v21 }
 0x227   :  { %v271_v24 = vmul.f32 %v270_v23, %v267_v22 }
 0x229   :  { %541 = vmatmul.mubr.f32.vlgmr.msra.gmra.mrb[2].mxu0 %v271_v24 }
 0x2fc   :  { %v361_v25 = vpop.f32.mrb[2].mxu0 }
 0x2fd   :  { %v362_v26 = vadd.f32 %v386_v0, %v361_v25  ;;  %v542_v27 = vpop.f32.mrb[3].mxu0 }
 0x2ff   :  { %v365_v28 = vadd.f32 %v362_v26, %v171_v62 }
 0x301   :  { %366 = vst [vmem:[#allocation10] sm:$0xff] %v365_v28 }
 0x302   :  { %726 = shalt.err (!%p723_p8)
}
 0x303   :  { %s727_s9 = scalar_lea.hbm %s910_s7, 128 }
 0x304   :  { %p728_p9 = scmp.ne.s32.totalorder %s910_s7, %s727_s9  ;;  %p731_p10 = scmp.lt.u32.totalorder %s727_s9, %s910_s7 }
 0x306   :  { %p733_p11 = pnand %p731_p10, %p728_p9 }
 0x308   :  { %736 = shalt.err (!%p733_p11)
}
 0x309   :  { %376 = dma.vmem_to_hbm [thread:$0]  %s374_s29, 128, %s910_s7, [#allocation4]  }
 0x30a   :  { %743 = dma.done.wait [#allocation4], 128  }
 0x30b   :  { %744 = vsyncadd [#allocation4], 4294967168 }
 0x30c   :  { %380 = vsyncpa [#allocation3], 1 }
 0x30d   :  { %381 = vsyncpa [#allocation6], 1 }
 0x30e   :  { %382 = vsyncpa [#allocation9], 1 }
 0x30f   :  { %383 = vsyncpa [#allocation4], 1 }

// kernel: tpu_custom_call.1
= control target key start
LH: loop header
LB: loop body
LE: loop exit
PB: predicated region body
PF: predicated region fallthrough
CT: control target
= control target key end

     0   :  { %12 = vsyncpa [#allocation3], 0  ;;  %s903_s0 = inlined_call_operand.hbm [shape: f32[8,128], index: 0, kind: input, shape index: {}]   ;;  %s904_s1 = inlined_call_operand.hbm [shape: f32[128,128], index: 1, kind: input, shape index: {}]   ;;  %s905_s2 = inlined_call_operand.vmem [shape: f32[1,128], index: 2, kind: input, shape index: {}]   ;;  %s906_s3 = inlined_call_operand.hbm [shape: f32[128,128], index: 3, kind: input, shape index: {}]   ;;  %s907_s4 = inlined_call_operand.vmem [shape: f32[1,128], index: 4, kind: input, shape index: {}]   ;;  %s908_s5 = inlined_call_operand.hbm [shape: f32[128,128], index: 5, kind: input, shape index: {}]   ;;  %s909_s6 = inlined_call_operand.vmem [shape: f32[1,128], index: 6, kind: input, shape index: {}]   ;;  %s910_s7 = inlined_call_operand.hbm [shape: f32[8,128], index: 7, kind: output, shape index: {}]  }
   0x1   :  { %13 = vsyncpa [#allocation6], 0 }
   0x2   :  { %14 = vsyncpa [#allocation9], 0 }
   0x3   :  { %15 = vsyncpa [#allocation4], 0  ;;  %s745_s24 = smov [#allocation5]   ;;  %s627_s28 = scalar_lea.hbm %s904_s1, 2048 }
   0x4   :  { %s31_s25 = sshll.u32 %s745_s24, 4  ;;  %p628_p0 = scmp.ne.s32.totalorder %s904_s1, %s627_s28  ;;  %s32_s25 = int_to_ptr.vmem [resolvable:$true] %s31_s25 }
   0x5   :  { %p631_p1 = scmp.lt.u32.totalorder %s627_s28, %s904_s1 }
   0x7   :  { %p633_p2 = pnand %p631_p1, %p628_p0 }
   0x9   :  { %636 = shalt.err (!%p633_p2)
}
   0xa   :  { %s637_s10 = scalar_lea.vmem %s32_s25, 2048  ;;  %p642_p4 = scmp.lt.s32.totalorder %s32_s25, %s32_s25 }
   0xb   :  { %p638_p3 = scmp.ne.s32.totalorder %s32_s25, %s637_s10  ;;  %p643_p5 = scmp.lt.s32.totalorder %s637_s10, %s637_s10 }
   0xd   :  { %p644_p6 = por %p643_p5, %p642_p4 }
   0xf   :  { %p645_p7 = pnand %p644_p6, %p638_p3 }
  0x11   :  { %648 = shalt.err (!%p645_p7)
}
  0x12   :  { %s746_s11 = smov 128   ;;  %s747_s12 = smov 8  }
  0x13   :  { %37 = dma.hbm_to_vmem [thread:$0]  %s904_s1, 2048, %s32_s25, [#allocation6], %s746_s11, %s746_s11, %s747_s12  }
  0x14   :  { %s748_s15 = smov [#allocation2]   ;;  %s749_s17 = smov [#allocation7]  }
  0x15   :  { %s22_s16 = sshll.u32 %s748_s15, 4  ;;  %s45_s18 = sshll.u32 %s749_s17, 4  ;;  %s23_s16 = int_to_ptr.vmem [resolvable:$true] %s22_s16  ;;  %s46_s18 = int_to_ptr.vmem [resolvable:$true] %s45_s18 }
  0x16   :  { %s649_s21 = scalar_lea.hbm %s903_s0, 128 }
  0x17   :  { %p650_p8 = scmp.ne.s32.totalorder %s903_s0, %s649_s21  ;;  %p653_p9 = scmp.lt.u32.totalorder %s649_s21, %s903_s0 }
  0x19   :  { %p655_p10 = pnand %p653_p9, %p650_p8 }
  0x1b   :  { %658 = shalt.err (!%p655_p10)
}
  0x1c   :  { %s659_s1 = scalar_lea.vmem %s23_s16, 128  ;;  %p664_p12 = scmp.lt.s32.totalorder %s23_s16, %s23_s16 }
  0x1d   :  { %p660_p11 = scmp.ne.s32.totalorder %s23_s16, %s659_s1  ;;  %p665_p13 = scmp.lt.s32.totalorder %s659_s1, %s659_s1 }
  0x1f   :  { %p666_p0 = por %p665_p13, %p664_p12 }
  0x21   :  { %p667_p1 = pnand %p666_p0, %p660_p11 }
  0x23   :  { %670 = shalt.err (!%p667_p1)
}
  0x24   :  { %25 = dma.hbm_to_vmem [thread:$0]  %s903_s0, 128, %s23_s16, [#allocation3]  }
  0x25   :  { %s671_s30 = scalar_lea.hbm %s906_s3, 2048 }
  0x26   :  { %p672_p2 = scmp.ne.s32.totalorder %s906_s3, %s671_s30  ;;  %p675_p3 = scmp.lt.u32.totalorder %s671_s30, %s906_s3 }
  0x28   :  { %p677_p4 = pnand %p675_p3, %p672_p2 }
  0x2a   :  { %680 = shalt.err (!%p677_p4)
}
  0x2b   :  { %s681_s14 = scalar_lea.vmem %s46_s18, 2048  ;;  %p686_p6 = scmp.lt.s32.totalorder %s46_s18, %s46_s18 }
  0x2c   :  { %p682_p5 = scmp.ne.s32.totalorder %s46_s18, %s681_s14  ;;  %p687_p7 = scmp.lt.s32.totalorder %s681_s14, %s681_s14 }
  0x2e   :  { %p688_p8 = por %p687_p7, %p686_p6 }
  0x30   :  { %p689_p9 = pnand %p688_p8, %p682_p5 }
  0x32   :  { %692 = shalt.err (!%p689_p9)
}
  0x33   :  { %51 = dma.hbm_to_vmem [thread:$0]  %s906_s3, 2048, %s46_s18, [#allocation6], %s746_s11, %s746_s11, %s747_s12  }
  0x34   :  { %s750_s16 = smov [#allocation8]   ;;  %s693_s21 = scalar_lea.hbm %s908_s5, 2048 }
  0x35   :  { %s59_s17 = sshll.u32 %s750_s16, 4  ;;  %p694_p10 = scmp.ne.s32.totalorder %s908_s5, %s693_s21  ;;  %s60_s17 = int_to_ptr.vmem [resolvable:$true] %s59_s17 }
  0x36   :  { %p697_p11 = scmp.lt.u32.totalorder %s693_s21, %s908_s5 }
  0x38   :  { %p699_p12 = pnand %p697_p11, %p694_p10 }
  0x3a   :  { %702 = shalt.err (!%p699_p12)
}
  0x3b   :  { %s703_s1 = scalar_lea.vmem %s60_s17, 2048  ;;  %p708_p0 = scmp.lt.s32.totalorder %s60_s17, %s60_s17 }
  0x3c   :  { %p704_p13 = scmp.ne.s32.totalorder %s60_s17, %s703_s1  ;;  %p709_p1 = scmp.lt.s32.totalorder %s703_s1, %s703_s1 }
  0x3e   :  { %p710_p2 = por %p709_p1, %p708_p0 }
  0x40   :  { %p711_p3 = pnand %p710_p2, %p704_p13 }
  0x42   :  { %714 = shalt.err (!%p711_p3)
}
  0x43   :  { %65 = dma.hbm_to_vmem [thread:$0]  %s908_s5, 2048, %s60_s17, [#allocation9], %s746_s11, %s746_s11, %s747_s12  }
  0x44   :  { %737 = dma.done.wait [#allocation3], 128  }
  0x45   :  { %738 = vsyncadd [#allocation3], 4294967168 }
  0x46   :  { %739 = dma.done.wait [#allocation6], 4096  }
  0x47   :  { %740 = vsyncadd [#allocation6], 4294963200 }
  0x48   :  { %741 = dma.done.wait [#allocation9], 2048  }
  0x49   :  { %742 = vsyncadd [#allocation9], 4294965248  ;;  %v751_v0 = vmov 0.0|0.0   ;;  %vm752_vm0 = vmmov 0   ;;  %v753_v1 = vmov 0.0   ;;  %v81_v2 = vld [vmem:[#allocation5] sm:$0xff] }
  0x4a   :  { %543 = vmatprep.subr.bf16.mxu0 %v751_v0  ;;  %470 = vmatprep.mubr.msk.f32.mxu0 %vm752_vm0, %v753_v1  ;;  %v82_v3 = vld [vmem:[#allocation5 + $0x8] sm:$0xff]  ;;  %v83_v4 = vld [vmem:[#allocation5 + $0x10] sm:$0xff]  ;;  %v84_v6 = vld [vmem:[#allocation5 + $0x18] sm:$0xff]  ;;  %s754_s28 = smov [#allocation10]  }
  0x4b   :  { %567 = vmatprep.subr.bf16.mxu1 %v751_v0  ;;  %505 = vmatprep.mubr.msk.f32.mxu1 %vm752_vm0, %v753_v1  ;;  %v544_v5 = vpack.c.bf16 %v82_v3, %v81_v2  ;;  %v547_v7 = vpack.c.bf16 %v84_v6, %v83_v4  ;;  %v85_v8 = vld [vmem:[#allocation5 + $0x20] sm:$0xff]  ;;  %v86_v9 = vld [vmem:[#allocation5 + $0x28] sm:$0xff]  ;;  %v176_v12 = vld [vmem:[#allocation7 + $0x10] sm:$0xff]  ;;  %s373_s29 = sshll.u32 %s754_s28, 4  ;;  %s374_s29 = int_to_ptr.vmem [resolvable:$true] %s373_s29 }
  0x4c   :  { %v174_v10 = vld [vmem:[#allocation7] sm:$0xff]  ;;  %v175_v11 = vld [vmem:[#allocation7 + $0x8] sm:$0xff]  ;;  %v177_v13 = vld [vmem:[#allocation7 + $0x18] sm:$0xff]  ;;  %v550_v14 = vpack.c.bf16 %v86_v9, %v85_v8  ;;  %p720_p5 = scmp.lt.s32.totalorder %s374_s29, %s374_s29 }
  0x4d   :  { %545 = vmatpush3.bf16.msra.mxu0 %v544_v5  ;;  %v568_v15 = vpack.c.bf16 %v175_v11, %v174_v10  ;;  %v87_v16 = vld [vmem:[#allocation5 + $0x30] sm:$0xff]  ;;  %v88_v17 = vld [vmem:[#allocation5 + $0x38] sm:$0xff]  ;;  %v571_v18 = vpack.c.bf16 %v177_v13, %v176_v12  ;;  %v178_v19 = vld [vmem:[#allocation7 + $0x20] sm:$0xff] }
  0x4e   :  { %546 = vmatprep.subr.bf16.mxu0 %v751_v0  ;;  %v179_v20 = vld [vmem:[#allocation7 + $0x28] sm:$0xff]  ;;  %v553_v21 = vpack.c.bf16 %v88_v17, %v87_v16  ;;  %v89_v22 = vld [vmem:[#allocation5 + $0x40] sm:$0xff]  ;;  %v180_v25 = vld [vmem:[#allocation7 + $0x30] sm:$0xff] }
  0x4f   :  { %569 = vmatpush3.bf16.msra.mxu1 %v568_v15  ;;  %v90_v23 = vld [vmem:[#allocation5 + $0x48] sm:$0xff]  ;;  %v574_v24 = vpack.c.bf16 %v179_v20, %v178_v19  ;;  %v181_v26 = vld [vmem:[#allocation7 + $0x38] sm:$0xff]  ;;  %v91_v28 = vld [vmem:[#allocation5 + $0x50] sm:$0xff] }
  0x50   :  { %570 = vmatprep.subr.bf16.mxu1 %v751_v0  ;;  %v556_v27 = vpack.c.bf16 %v90_v23, %v89_v22  ;;  %v92_v29 = vld [vmem:[#allocation5 + $0x58] sm:$0xff]  ;;  %v577_v30 = vpack.c.bf16 %v181_v26, %v180_v25  ;;  %v182_v31 = vld [vmem:[#allocation7 + $0x40] sm:$0xff]  ;;  %v183_v32 = vld [vmem:[#allocation7 + $0x48] sm:$0xff] }
  0x51   :  { %548 = vmatpush3.bf16.msra.mxu0 %v547_v7  ;;  %v559_v33 = vpack.c.bf16 %v92_v29, %v91_v28  ;;  %v93_v34 = vld [vmem:[#allocation5 + $0x60] sm:$0xff]  ;;  %v94_v35 = vld [vmem:[#allocation5 + $0x68] sm:$0xff]  ;;  %v580_v36 = vpack.c.bf16 %v183_v32, %v182_v31  ;;  %v184_v37 = vld [vmem:[#allocation7 + $0x50] sm:$0xff] }
  0x52   :  { %549 = vmatprep.subr.bf16.mxu0 %v751_v0  ;;  %v185_v38 = vld [vmem:[#allocation7 + $0x58] sm:$0xff]  ;;  %v562_v39 = vpack.c.bf16 %v94_v35, %v93_v34  ;;  %v95_v40 = vld [vmem:[#allocation5 + $0x70] sm:$0xff]  ;;  %v186_v43 = vld [vmem:[#allocation7 + $0x60] sm:$0xff] }
  0x53   :  { %572 = vmatpush3.bf16.msra.mxu1 %v571_v18  ;;  %v96_v41 = vld [vmem:[#allocation5 + $0x78] sm:$0xff]  ;;  %v583_v42 = vpack.c.bf16 %v185_v38, %v184_v37  ;;  %v187_v44 = vld [vmem:[#allocation7 + $0x68] sm:$0xff]  ;;  %v188_v48 = vld [vmem:[#allocation7 + $0x70] sm:$0xff] }
  0x54   :  { %573 = vmatprep.subr.bf16.mxu1 %v751_v0  ;;  %v565_v45 = vpack.c.bf16 %v96_v41, %v95_v40  ;;  %v586_v46 = vpack.c.bf16 %v187_v44, %v186_v43  ;;  %v80_v47 = vld [vmem:[#allocation2] sm:$0xff]  ;;  %v272_v51 = vld [vmem:[#allocation8] sm:$0xff]  ;;  %v273_v52 = vld [vmem:[#allocation8 + $0x8] sm:$0xff] }
  0x55   :  { %551 = vmatpush3.bf16.msra.mxu0 %v550_v14  ;;  %v189_v49 = vld [vmem:[#allocation7 + $0x78] sm:$0xff]  ;;  %v274_v53 = vld [vmem:[#allocation8 + $0x10] sm:$0xff]  ;;  %v592_v54 = vpack.c.bf16 %v273_v52, %v272_v51  ;;  %v276_v57 = vld [vmem:[#allocation8 + $0x20] sm:$0xff] }
  0x56   :  { %552 = vmatprep.subr.bf16.mxu0 %v751_v0  ;;  %v589_v50 = vpack.c.bf16 %v189_v49, %v188_v48  ;;  %v275_v55 = vld [vmem:[#allocation8 + $0x18] sm:$0xff]  ;;  %v277_v58 = vld [vmem:[#allocation8 + $0x28] sm:$0xff]  ;;  %v280_v4 = vld [vmem:[#allocation8 + $0x40] sm:$0xff] }
  0x57   :  { %575 = vmatpush3.bf16.msra.mxu1 %v574_v24  ;;  %v595_v56 = vpack.c.bf16 %v275_v55, %v274_v53  ;;  %v598_v59 = vpack.c.bf16 %v277_v58, %v276_v57  ;;  %v384_v60 = vld [vmem:[%s905_s2] ss:$0 sm:$0xff]  ;;  %v281_v5 = vld [vmem:[#allocation8 + $0x48] sm:$0xff]  ;;  %v282_v7 = vld [vmem:[#allocation8 + $0x50] sm:$0xff] }
  0x58   :  { %576 = vmatprep.subr.bf16.mxu1 %v751_v0  ;;  %v279_v2 = vld [vmem:[#allocation8 + $0x38] sm:$0xff]  ;;  %v604_v6 = vpack.c.bf16 %v281_v5, %v280_v4  ;;  %v284_v10 = vld [vmem:[#allocation8 + $0x60] sm:$0xff]  ;;  %v285_v11 = vld [vmem:[#allocation8 + $0x68] sm:$0xff] }
  0x59   :  { %554 = vmatpush3.bf16.msra.mxu0 %v553_v21  ;;  %v283_v8 = vld [vmem:[#allocation8 + $0x58] sm:$0xff]  ;;  %v610_v12 = vpack.c.bf16 %v285_v11, %v284_v10  ;;  %v286_v13 = vld [vmem:[#allocation8 + $0x70] sm:$0xff] }
  0x5a   :  { %555 = vmatprep.subr.bf16.mxu0 %v751_v0  ;;  %v607_v9 = vpack.c.bf16 %v283_v8, %v282_v7  ;;  %v287_v14 = vld [vmem:[#allocation8 + $0x78] sm:$0xff] }
  0x5b   :  { %578 = vmatpush3.bf16.msra.mxu1 %v577_v30  ;;  %v613_v15 = vpack.c.bf16 %v287_v14, %v286_v13  ;;  %v385_v16 = vld [vmem:[%s907_s4] ss:$0 sm:$0xff]  ;;  %s715_s4 = scalar_lea.vmem %s374_s29, 128 }
  0x5c   :  { %579 = vmatprep.subr.bf16.mxu1 %v751_v0  ;;  %p716_p4 = scmp.ne.s32.totalorder %s374_s29, %s715_s4  ;;  %p721_p6 = scmp.lt.s32.totalorder %s715_s4, %s715_s4 }
  0x5d   :  { %557 = vmatpush3.bf16.msra.mxu0 %v556_v27 }
  0x5e   :  { %558 = vmatprep.subr.bf16.mxu0 %v751_v0  ;;  %p722_p7 = por %p721_p6, %p720_p5 }
  0x5f   :  { %581 = vmatpush3.bf16.msra.mxu1 %v580_v36 }
  0x60   :  { %582 = vmatprep.subr.bf16.mxu1 %v751_v0  ;;  %p723_p8 = pnand %p722_p7, %p716_p4 }
  0x61   :  { %560 = vmatpush3.bf16.msra.mxu0 %v559_v33 }
  0x62   :  { %561 = vmatprep.subr.bf16.mxu0 %v751_v0 }
  0x63   :  { %584 = vmatpush3.bf16.msra.mxu1 %v583_v42 }
  0x64   :  { %585 = vmatprep.subr.bf16.mxu1 %v751_v0 }
  0x65   :  { %563 = vmatpush3.bf16.msra.mxu0 %v562_v39 }
  0x66   :  { %564 = vmatprep.subr.bf16.mxu0 %v751_v0 }
  0x67   :  { %587 = vmatpush3.bf16.msra.mxu1 %v586_v46 }
  0x68   :  { %588 = vmatprep.subr.bf16.mxu1 %v751_v0 }
  0x69   :  { %566 = vmatpush3.bf16.msra.mxu0 %v565_v45 }
  0x6a   :  { %591 = vmatprep.subr.bf16.mxu0 %v751_v0 }
  0x6b   :  { %590 = vmatpush3.bf16.msra.mxu1 %v589_v50 }
  0x6c   :  { %471 = vmatmul.mubr.f32.vlgmr.msra.gmra.mrb[0].mxu0 %v80_v47 }
  0x6d   :  { %540 = vmatprep.mubr.msk.f32.mxu0 %vm752_vm0, %v753_v1  ;;  %593 = vmatpush3.bf16.msra.mxu0 %v592_v54  ;;  %v278_v1 = vld [vmem:[#allocation8 + $0x30] sm:$0xff] }
  0x6e   :  { %594 = vmatprep.subr.bf16.mxu0 %v751_v0  ;;  %v601_v3 = vpack.c.bf16 %v279_v2, %v278_v1 }
  0x71   :  { %596 = vmatpush3.bf16.msra.mxu0 %v595_v56 }
  0x72   :  { %597 = vmatprep.subr.bf16.mxu0 %v751_v0 }
  0x75   :  { %599 = vmatpush3.bf16.msra.mxu0 %v598_v59 }
  0x76   :  { %600 = vmatprep.subr.bf16.mxu0 %v751_v0 }
  0x79   :  { %602 = vmatpush3.bf16.msra.mxu0 %v601_v3 }
  0x7a   :  { %603 = vmatprep.subr.bf16.mxu0 %v751_v0 }
  0x7d   :  { %605 = vmatpush3.bf16.msra.mxu0 %v604_v6 }
  0x7e   :  { %606 = vmatprep.subr.bf16.mxu0 %v751_v0 }
  0x81   :  { %608 = vmatpush3.bf16.msra.mxu0 %v607_v9 }
  0x82   :  { %609 = vmatprep.subr.bf16.mxu0 %v751_v0 }
  0x85   :  { %611 = vmatpush3.bf16.msra.mxu0 %v610_v12 }
  0x86   :  { %612 = vmatprep.subr.bf16.mxu0 %v751_v0  ;;  %v386_v0 = vld [vmem:[%s909_s6] ss:$0 sm:$0xff] }
  0x89   :  { %614 = vmatpush3.bf16.msra.mxu0 %v613_v15 }
 0x13f   :  { %v170_v61 = vpop.f32.mrb[0].mxu0 }
 0x140   :  { %v171_v62 = vadd.f32 %v384_v60, %v170_v61  ;;  %v472_v63 = vpop.f32.mrb[1].mxu0 }
 0x142   :  { %506 = vmatmul.mubr.f32.vlgmr.msra.gmra.mrb[0].mxu1 %v171_v62 }
 0x215   :  { %v263_v17 = vpop.f32.mrb[0].mxu1 }
 0x216   :  { %v264_v18 = vadd.f32 %v385_v16, %v263_v17  ;;  %v507_v19 = vpop.f32.mrb[1].mxu1 }
 0x218   :  { %v268_v20 = vmul.f32 0.70710677, %v264_v18  ;;  %v267_v22 = vmul.f32 0.5, %v264_v18 }
 0x21a   :  { %625 = verf.f32 %v268_v20 }
 0x224   :  { %v626_v21 = vpop.eup %625 }
 0x225   :  { %v270_v23 = vadd.f32 1.0, %v626_v21 }
 0x227   :  { %v271_v24 = vmul.f32 %v270_v23, %v267_v22 }
 0x229   :  { %541 = vmatmul.mubr.f32.vlgmr.msra.gmra.mrb[2].mxu0 %v271_v24 }
 0x2fc   :  { %v361_v25 = vpop.f32.mrb[2].mxu0 }
 0x2fd   :  { %v362_v26 = vadd.f32 %v386_v0, %v361_v25  ;;  %v542_v27 = vpop.f32.mrb[3].mxu0 }
 0x2ff   :  { %v365_v28 = vadd.f32 %v362_v26, %v171_v62 }
 0x301   :  { %366 = vst [vmem:[#allocation10] sm:$0xff] %v365_v28 }
 0x302   :  { %726 = shalt.err (!%p723_p8)
}
 0x303   :  { %s727_s9 = scalar_lea.hbm %s910_s7, 128 }
 0x304   :  { %p728_p9 = scmp.ne.s32.totalorder %s910_s7, %s727_s9  ;;  %p731_p10 = scmp.lt.u32.totalorder %s727_s9, %s910_s7 }
 0x306   :  { %p733_p11 = pnand %p731_p10, %p728_p9 }
 0x308   :  { %736 = shalt.err (!%p733_p11)
}
 0x309   :  { %376 = dma.vmem_to_hbm [thread:$0]  %s374_s29, 128, %s910_s7, [#allocation4]  }
 0x30a   :  { %743 = dma.done.wait [#allocation4], 128  }
 0x30b   :  { %744 = vsyncadd [#allocation4], 4294967168 }
 0x30c   :  { %380 = vsyncpa [#allocation3], 1 }
 0x30d   :  { %381 = vsyncpa [#allocation6], 1 }
 0x30e   :  { %382 = vsyncpa [#allocation9], 1 }
 0x30f   :  { %383 = vsyncpa [#allocation4], 1 }

</bundles_post_ra>
